<compile_context>
chip_gen: v5e
topology: v5e:2x2
jax: 0.10.0
libtpu: 0.0.40
codegen_flags: <defaults>
</compile_context>

<pallas_src>
import jax
import jax.numpy as jnp
from jax.experimental import pallas as pl
from jax.experimental.pallas import tpu as pltpu

_LANES = 128
_MiB = 1024 * 1024


def _scale_kernel(w_ref, x_ref, o_ref):
    # w_ref: (1,) float32 in SMEM (scalar prefetch).  clamp(min=0) == max(w, 0).
    # Clamp + cast the scalar once; multiply in the tensor's native dtype so
    # bf16 tiles don't pay per-element up/down casts.
    w = jnp.maximum(w_ref[0], jnp.float32(0.0)).astype(o_ref.dtype)
    o_ref[...] = x_ref[...] * w


def _chip_profile():
    """Per-generation block-size / buffering / scoped-VMEM choices."""
    try:
        kind = jax.devices()[0].device_kind.lower()
    except Exception:
        kind = ""
    if ("v7" in kind) or ("7x" in kind) or ("tpu7" in kind):
        # v7x: 3.2 TB/s HBM -> per-step overhead matters, so use bigger blocks.
        # 6 MiB x (3 input + 2 output) buffers = 30 MiB > 32 MiB scoped default
        # once compiler scratch is added, so raise the limit (64 MiB physical).
        return dict(block_bytes=6 * _MiB, buffer_count=3, vmem_limit_bytes=48 * _MiB)
    if "v6" in kind:
        # v6e: 32 MiB scoped default; 3 MiB x (3 + 2) = 15 MiB fits comfortably.
        return dict(block_bytes=3 * _MiB, buffer_count=3, vmem_limit_bytes=None)
    if "v5" in kind and ("lite" in kind or "5e" in kind):
        # v5e: scoped-VMEM default is only 16 MiB; keep 2 MiB blocks
        # (2 MiB x (3 + 2) = 10 MiB) — already ~85% of the ~820 GB/s roofline.
        return dict(block_bytes=2 * _MiB, buffer_count=3, vmem_limit_bytes=None)
    # Unknown / older chips: conservative defaults.
    return dict(block_bytes=2 * _MiB, buffer_count=2, vmem_limit_bytes=None)


def _input_spec(tile_rows, buffer_count):
    index_map = lambda i, w_ref: (i, 0)
    if buffer_count is not None and buffer_count > 2:
        try:
            return pl.BlockSpec((tile_rows, _LANES), index_map,
                                pipeline_mode=pl.Buffered(buffer_count))
        except (TypeError, AttributeError):
            pass  # older jax: fall back to default double buffering
    return pl.BlockSpec((tile_rows, _LANES), index_map)


def dummy_forward(x: jax.Array, w: jax.Array, *,
                  alias_input: bool = False,
                  target_block_bytes: int | None = None,
                  buffer_count: int | None = None,
                  vmem_limit_bytes: int | None = None) -> jax.Array:
    """clamp(w, min=0) * x, computed in a Pallas TPU kernel.

    x: any shape / dtype (output keeps x's dtype).
    w: scalar (or shape (1,)) float32 parameter.
    alias_input: write the result back into x's HBM buffer (only a real
      in-place win when x is donated at the jit boundary; otherwise XLA
      inserts a protective copy and x is left untouched).
    """
    prof = _chip_profile()
    if target_block_bytes is None:
        target_block_bytes = prof["block_bytes"]
    if buffer_count is None:
        buffer_count = prof["buffer_count"]
    if vmem_limit_bytes is None:
        vmem_limit_bytes = prof["vmem_limit_bytes"]

    w = jnp.asarray(w, dtype=jnp.float32).reshape(1)

    orig_shape = x.shape
    dtype = x.dtype
    n = x.size
    itemsize = jnp.dtype(dtype).itemsize

    # Lane-dense slab; pad the flattened tail to a multiple of 128 if needed.
    pad = (-n) % _LANES
    if pad:
        flat = jnp.concatenate([x.reshape(-1), jnp.zeros((pad,), dtype=dtype)])
    else:
        flat = x.reshape(-1)
    rows = (n + pad) // _LANES
    x2d = flat.reshape(rows, _LANES)

    # Rows per block: ~target_block_bytes rounded down to a multiple of 32
    # (legal, unpadded sublane tiling for f32 (8,128), bf16 (16,128),
    # int8/fp8 (32,128)), with a 32-row floor.
    bytes_per_row = _LANES * itemsize
    tile_rows = max(32, (target_block_bytes // bytes_per_row) // 32 * 32)
    if tile_rows >= rows:
        tile_rows = rows  # full-extent block is always legal (tiny inputs)
    else:
        # Balance blocks so the last grid step isn't a near-empty remainder.
        num_blocks = pl.cdiv(rows, tile_rows)
        per_block = -(-rows // num_blocks)      # ceil(rows / num_blocks)
        per_block = -(-per_block // 32) * 32    # round up to a multiple of 32
        tile_rows = min(tile_rows, per_block)

    grid = (pl.cdiv(rows, tile_rows),)  # partial last block handled by Pallas

    # Pure streaming: read N + write N bytes, one mul per element.
    cost = pl.CostEstimate(flops=n, transcendentals=0,
                           bytes_accessed=2 * n * itemsize)

    extra = {}
    if alias_input:
        # Flat args are (w, x2d): x2d is input index 1 -> aliases output 0.
        extra["input_output_aliases"] = {1: 0}

    out2d = pl.pallas_call(
        _scale_kernel,
        out_shape=jax.ShapeDtypeStruct((rows, _LANES), dtype),
        grid_spec=pltpu.PrefetchScalarGridSpec(
            num_scalar_prefetch=1,
            grid=grid,
            in_specs=[_input_spec(tile_rows,
                                  buffer_count if grid[0] > 2 else None)],
            out_specs=pl.BlockSpec((tile_rows, _LANES), lambda i, w_ref: (i, 0)),
        ),
        compiler_params=pltpu.CompilerParams(
            # Multi-step parallel grid -> runtime may shard rows across the
            # two TensorCores on v7x; harmless elsewhere.
            dimension_semantics=("parallel",),
            vmem_limit_bytes=vmem_limit_bytes,
        ),
        cost_estimate=cost,
        **extra,
    )(w, x2d)

    out_flat = out2d.reshape(-1)
    if pad:
        out_flat = out_flat[:n]
    return out_flat.reshape(orig_shape)


if __name__ == "__main__":
    key = jax.random.PRNGKey(0)
    k1, k2, k3 = jax.random.split(key, 3)

    # 1) Small NCHW f32 input (single-block path), negative and positive w.
    B, C, H, W = 2, 4, 16, 16
    x = jax.random.normal(k1, (B, C, H, W), dtype=jnp.float32)
    w_neg = jnp.array([-0.5], dtype=jnp.float32)   # clamp(min=0) -> 0 -> zeros out
    w_pos = jnp.array([1.5], dtype=jnp.float32)

    out_neg = jax.block_until_ready(dummy_forward(x, w_neg))
    out_pos = jax.block_until_ready(dummy_forward(x, w_pos))
    assert out_neg.shape == x.shape and out_neg.dtype == x.dtype
    assert jnp.allclose(out_neg, jnp.maximum(w_neg[0], 0.0) * x, atol=1e-6)
    assert jnp.allclose(out_pos, jnp.maximum(w_pos[0], 0.0) * x, atol=1e-6)

    # 2) Multi-step grid + partial last block + deep input buffering
    #    (tiny target block so the grid has several steps at small shapes).
    x2 = jax.random.normal(k2, (2, 4, 40, 40), dtype=jnp.float32)  # 100 rows of 128
    out2 = jax.block_until_ready(
        dummy_forward(x2, w_pos, target_block_bytes=16 * 1024, buffer_count=3))
    assert jnp.allclose(out2, jnp.maximum(w_pos[0], 0.0) * x2, atol=1e-6)

    # 3) Total size NOT a multiple of 128 -> pad/strip path.
    x_odd = jax.random.normal(k3, (3, 5, 7), dtype=jnp.float32)    # 105 elements
    out_odd = jax.block_until_ready(dummy_forward(x_odd, w_pos))
    assert out_odd.shape == x_odd.shape
    assert jnp.allclose(out_odd, jnp.maximum(w_pos[0], 0.0) * x_odd, atol=1e-6)

    # 4) bf16 path (multiply in native dtype; compare with bf16 tolerance).
    x_bf16 = x.astype(jnp.bfloat16)
    out_bf16 = jax.block_until_ready(dummy_forward(x_bf16, w_pos))
    ref_bf16 = (jnp.maximum(w_pos[0], 0.0) * x_bf16.astype(jnp.float32)
                ).astype(jnp.bfloat16)
    assert out_bf16.dtype == jnp.bfloat16
    assert jnp.allclose(out_bf16.astype(jnp.float32), ref_bf16.astype(jnp.float32),
                        rtol=2e-2, atol=1e-2)

    # 5) Output-aliases-input path (without donation XLA protects x with a copy;
    #    donate x at a jit boundary for the actual in-place writeback win).
    ref_alias = jnp.maximum(w_pos[0], 0.0) * x
    out_alias = jax.block_until_ready(dummy_forward(x, w_pos, alias_input=True))
    assert jnp.allclose(out_alias, ref_alias, atol=1e-6)
    assert jnp.allclose(x, out_neg * 0.0 + x)  # x itself untouched (not donated)

    print("KERNEL_OK")
</pallas_src>

<mosaic_0001>
module attributes {stable_mosaic.version = 11 : i64} {
  func.func @_scale_kernel(%arg0: i32, %arg1: memref<1xf32, #tpu.memory_space<smem>>, %arg2: memref<16x128xf32, #tpu.memory_space<vmem>>, %arg3: memref<16x128xf32, #tpu.memory_space<vmem>>) attributes {dimension_semantics = [#tpu.dimension_semantics<parallel>], iteration_bounds = array<i64: 1>, scalar_prefetch = 1 : i64, scratch_operands = 0 : i64, tpu.core_type = #tpu.core_type<tc>, window_params = [{transform_indices = @transform_0, window_bounds = array<i64: 16, 128>}, {transform_indices = @transform_1, window_bounds = array<i64: 16, 128>}]} {
    %c0 = arith.constant 0 : index
    %0 = memref.load %arg1[%c0] : memref<1xf32, #tpu.memory_space<smem>>
    %cst = arith.constant 0.000000e+00 : f32
    %1 = arith.maximumf %0, %cst : f32
    %c0_0 = arith.constant 0 : index
    %c0_1 = arith.constant 0 : index
    %2 = vector.load %arg2[%c0_0, %c0_1] : memref<16x128xf32, #tpu.memory_space<vmem>>, vector<16x128xf32>
    %3 = vector.broadcast %1 : f32 to vector<16x128xf32>
    %4 = arith.mulf %2, %3 : vector<16x128xf32>
    %c0_2 = arith.constant 0 : index
    %c0_3 = arith.constant 0 : index
    %5 = vector.load %arg3[%c0_2, %c0_3] : memref<16x128xf32, #tpu.memory_space<vmem>>, vector<16x128xf32>
    tpu.vector_store %arg3[%c0_2, %c0_3], %4 {strides = array<i32>} : memref<16x128xf32, #tpu.memory_space<vmem>>, vector<16x128xf32>,
    return
  }
  func.func @transform_0(%arg0: i32, %arg1: memref<1xf32, #tpu.memory_space<smem>>) -> (i32, i32) {
    %c0_i32 = arith.constant 0 : i32
    %c0_i32_0 = arith.constant 0 : i32
    return %arg0, %c0_i32 : i32, i32
  }
  func.func @transform_1(%arg0: i32, %arg1: memref<1xf32, #tpu.memory_space<smem>>) -> (i32, i32) {
    %c0_i32 = arith.constant 0 : i32
    %c0_i32_0 = arith.constant 0 : i32
    return %arg0, %c0_i32 : i32, i32
  }
}

</mosaic_0001>

<bundles_post_ra>
// kernel: tpu_custom_call.1
= control target key start
LH: loop header
LB: loop body
LE: loop exit
PB: predicated region body
PF: predicated region fallthrough
CT: control target
= control target key end

     0   :  { %8 = vsyncpa [#allocation5], 0  ;;  %s141_s0 = inlined_call_operand.<no memory space> [shape: f32[1], index: 0, kind: input, shape index: {}]   ;;  %s142_s1 = inlined_call_operand.hbm [shape: f32[16,128], index: 1, kind: input, shape index: {}]   ;;  %s143_s2 = inlined_call_operand.hbm [shape: f32[16,128], index: 2, kind: output, shape index: {}]  }
   0x1   :  { %9 = vsyncpa [#allocation6], 0  ;;  %s14_s11 = sshll.u32 %s142_s1, 4  ;;  %s112_s12 = smov [#allocation4]   ;;  %s15_s11 = int_to_ptr.hbm [resolvable:$true] %s14_s11 }
   0x2   :  { %s16_s13 = sshll.u32 %s112_s12, 4  ;;  %s113_s14 = smov 128   ;;  %s17_s13 = int_to_ptr.vmem [resolvable:$true] %s16_s13 }
   0x3   :  { %s114_s15 = smov 8  }
   0x4   :  { %22 = dma.hbm_to_vmem [thread:$0]  %s15_s11, 256, %s17_s13, [#allocation5], %s113_s14, %s113_s14, %s114_s15  }
   0x5   :  { %108 = dma.done.wait [#allocation5], 256  }
   0x6   :  { %109 = vsyncadd [#allocation5], 4294967040  ;;  %s115_s16 = smov 0.0   ;;  %s116_s20 = smov [#allocation7]   ;;  %v29_v1 = vld [vmem:[#allocation4] sm:$0xff]  ;;  %v30_v2 = vld [vmem:[#allocation4 + $0x8] sm:$0xff] }
   0x7   :  { %s28_s19 = smax.f32 %s115_s16, %s141_s0  ;;  %s40_s21 = sshll.u32 %s116_s20, 4  ;;  %s41_s21 = int_to_ptr.vmem [resolvable:$true] %s40_s21 }
   0x8   :  { %v31_v0 = vstv %s28_s19  ;;  %s42_s1 = sshll.u32 %s143_s2, 4  ;;  %s43_s1 = int_to_ptr.hbm [resolvable:$true] %s42_s1 }
   0x9   :  { %v32_v3 = vmul.f32 %v31_v0, %v29_v1  ;;  %v33_v4 = vmul.f32 %v31_v0, %v30_v2 }
   0xb   :  { %34 = vst [vmem:[#allocation7] sm:$0xff] %v32_v3 }
   0xc   :  { %35 = vst [vmem:[#allocation7 + $0x8] sm:$0xff] %v33_v4 }
   0xd   :  { %48 = dma.vmem_to_hbm [thread:$0]  %s41_s21, 256, %s43_s1, [#allocation6], %s113_s14, %s113_s14, %s114_s15  }
   0xe   :  { %110 = dma.done.wait [#allocation6], 256  }
   0xf   :  { %111 = vsyncadd [#allocation6], 4294967040 }
  0x10   :  { %53 = vsyncpa [#allocation5], 1 }
  0x11   :  { %54 = vsyncpa [#allocation6], 1 }

</bundles_post_ra>
